<compile_context>
chip_gen: v6e
topology: v6e:2x2x1
jax: 0.10.0
libtpu: 0.0.40
codegen_flags: <defaults>
</compile_context>

<pallas_src>
import functools

import jax
import jax.numpy as jnp
from jax import lax
from jax.experimental import pallas as pl
from jax.experimental.pallas import tpu as pltpu

# residual-branch modes
_RES_IDENTITY = 0   # C_in == C_out: residual is the (masked) input itself
_RES_FUSED = 1      # 1x1 trans conv folded into the stacked weight matrix
_RES_SEPARATE = 2   # 1x1 trans conv as its own matmul (even kernel_size only)


def _gcnn_kernel(x_ref, mask_ref, wcat_ref, bcat_ref, *refs,
                 kernel_size, dilation, padding, tile_l, num_l_tiles,
                 c_out, res_mode):
    if res_mode == _RES_SEPARATE:
        wt_ref, bt_ref, out_ref = refs
    else:
        (out_ref,) = refs

    c_out_total = wcat_ref.shape[1]
    halo = 2 * padding

    # Haloed window of the (already zero-padded) sequence for this L-tile.
    if num_l_tiles == 1:
        xh = x_ref[...]                               # (C_in, L + 2p)
        mh = mask_ref[...]                            # (1,    L + 2p)
    else:
        # tile_l is a multiple of 128 on this path -> aligned dynamic slice.
        start = pl.multiple_of(pl.program_id(1) * tile_l, 128)
        xh = x_ref[:, pl.ds(start, tile_l + halo)]
        mh = mask_ref[:, pl.ds(start, tile_l + halo)]

    # X = X * attention_mask (the padded mask is zero in the halo as well).
    xm = xh * mh

    # K shifted matmuls against the stacked (conv1 | conv2 | trans) weights.
    acc = jnp.zeros((c_out_total, tile_l), jnp.float32)
    for k in range(kernel_size):
        xs = xm[:, k * dilation:k * dilation + tile_l]
        acc = acc + jnp.dot(wcat_ref[k], xs, preferred_element_type=jnp.float32)
    acc = acc + bcat_ref[...]                         # stacked biases

    conv1 = acc[:c_out]
    gate = jax.nn.sigmoid(acc[c_out:2 * c_out])       # single-transcendental gate
    mask_t = mh[:, padding:padding + tile_l]

    if res_mode == _RES_IDENTITY:
        res = xm[:, padding:padding + tile_l]
    elif res_mode == _RES_FUSED:
        res = acc[2 * c_out:3 * c_out]
    else:
        xc = xm[:, padding:padding + tile_l]
        res = jnp.dot(wt_ref[0], xc, preferred_element_type=jnp.float32) + bt_ref[...]

    # y = res*(1-gate) + conv1*gate  ==  res + gate*(conv1 - res); fold mask.
    y = res + gate * (conv1 - res)
    out_ref[...] = (y * mask_t).astype(out_ref.dtype)


def gcnn_block(x, attention_mask, w1, b1, w2, b2, wt=None, bt=None,
               *, kernel_size, padding, dilation=1, max_tile_l=1024):
    """Pallas forward of GCNN_block.

    x:              (B, C_in, L)  float32   (NCW, same as torch Conv1d)
    attention_mask: (B, L)
    w1, w2:         (C_out, C_in, K)   conv weights (PyTorch layout)
    b1, b2:         (C_out,)           conv biases
    wt, bt:         (C_out, C_in, 1) / (C_out,)  only used when C_in != C_out
    Returns (Y, attention_mask) with Y of shape (B, C_out, L).
    """
    B, c_in, L = x.shape
    c_out, _, k_w = w1.shape
    assert k_w == kernel_size
    if 2 * padding != dilation * (kernel_size - 1):
        raise ValueError("GCNN_block residual add requires a 'same'-length conv: "
                         "2*padding == dilation*(kernel_size-1)")
    same_channels = (c_in == c_out)
    if not same_channels and wt is None:
        raise ValueError("wt/bt required when input_channel != output_channel")

    # ---- L tiling --------------------------------------------------------
    if L <= max_tile_l:
        tile_l, num_l_tiles = L, 1
    else:
        tile_l = max_tile_l                         # multiple of 128
        num_l_tiles = pl.cdiv(L, tile_l)
    l_pad = num_l_tiles * tile_l
    halo = 2 * padding

    # Zero-pad the sequence axis once in the wrapper (conv padding + tile tail).
    x_p = jnp.pad(x.astype(jnp.float32),
                  ((0, 0), (0, 0), (padding, padding + l_pad - L)))
    m_p = jnp.pad(attention_mask.astype(jnp.float32),
                  ((0, 0), (padding, padding + l_pad - L)))[:, None, :]

    # ---- stack conv1 / conv2 / (trans) weights along output channels ------
    parts_w = [w1.astype(jnp.float32), w2.astype(jnp.float32)]
    parts_b = [b1.astype(jnp.float32), b2.astype(jnp.float32)]
    if same_channels:
        res_mode = _RES_IDENTITY
    elif kernel_size % 2 == 1:
        # center tap satisfies k_center*dilation == padding -> fold trans in.
        res_mode = _RES_FUSED
        k_center = (kernel_size - 1) // 2
        wt_full = jnp.zeros((c_out, c_in, kernel_size), jnp.float32)
        wt_full = wt_full.at[:, :, k_center].set(wt[:, :, 0].astype(jnp.float32))
        parts_w.append(wt_full)
        parts_b.append(bt.astype(jnp.float32))
    else:
        res_mode = _RES_SEPARATE

    c_out_total = c_out * len(parts_w)
    wcat = jnp.transpose(jnp.concatenate(parts_w, axis=0), (2, 0, 1))  # (K, C_out_tot, C_in)
    bcat = jnp.concatenate(parts_b, axis=0).reshape(c_out_total, 1)

    # ---- specs -------------------------------------------------------------
    in_specs = [
        pl.BlockSpec((None, c_in, l_pad + halo), lambda b, t: (b, 0, 0)),   # x (padded row)
        pl.BlockSpec((None, 1, l_pad + halo), lambda b, t: (b, 0, 0)),      # mask
        pl.BlockSpec((kernel_size, c_out_total, c_in), lambda b, t: (0, 0, 0)),  # W_cat
        pl.BlockSpec((c_out_total, 1), lambda b, t: (0, 0)),                # b_cat
    ]
    args = [x_p, m_p, wcat, bcat]
    if res_mode == _RES_SEPARATE:
        in_specs += [
            pl.BlockSpec((1, c_out, c_in), lambda b, t: (0, 0, 0)),         # wt
            pl.BlockSpec((c_out, 1), lambda b, t: (0, 0)),                  # bt
        ]
        args += [jnp.transpose(wt.astype(jnp.float32), (2, 0, 1)),
                 bt.astype(jnp.float32).reshape(c_out, 1)]

    # VMEM budget (double-buffered inputs/outputs + temporaries) with headroom,
    # capped at 64 MiB so it is safe on v7x as well as v5e/v6e.
    est = 4 * (2 * (c_in + 1) * (l_pad + halo)
               + 2 * c_out * tile_l
               + 8 * c_out_total * tile_l
               + kernel_size * c_out_total * c_in) + (1 << 20)
    vmem_limit = int(min(max(2 * est, 32 * 1024 * 1024), 64 * 1024 * 1024))

    kernel = functools.partial(
        _gcnn_kernel,
        kernel_size=kernel_size, dilation=dilation, padding=padding,
        tile_l=tile_l, num_l_tiles=num_l_tiles, c_out=c_out, res_mode=res_mode)

    out = pl.pallas_call(
        kernel,
        out_shape=jax.ShapeDtypeStruct((B, c_out, l_pad), jnp.float32),
        grid_spec=pltpu.PrefetchScalarGridSpec(
            num_scalar_prefetch=0,
            grid=(B, num_l_tiles),
            in_specs=in_specs,
            out_specs=pl.BlockSpec((None, c_out, tile_l), lambda b, t: (b, 0, t)),
        ),
        compiler_params=pltpu.CompilerParams(
            dimension_semantics=("parallel", "parallel"),
            vmem_limit_bytes=vmem_limit),
    )(*args)

    if l_pad != L:
        out = out[:, :, :L]
    return out, attention_mask


# ------------------------- pure-JAX reference -------------------------------
def _ref_forward(x, attention_mask, w1, b1, w2, b2, wt, bt,
                 *, padding, dilation):
    dn = lax.conv_dimension_numbers(x.shape, w1.shape, ('NCH', 'OIH', 'NCH'))

    def conv(xx, w, b, p, d):
        y = lax.conv_general_dilated(
            xx, w, window_strides=(1,), padding=[(p, p)],
            rhs_dilation=(d,), dimension_numbers=dn,
            precision=lax.Precision.HIGHEST)
        return y + b[None, :, None]

    m = attention_mask.astype(jnp.float32)[:, None, :]
    xm = x * m
    gate = jax.nn.sigmoid(conv(xm, w2, b2, padding, dilation))
    if w1.shape[0] == x.shape[1]:       # C_out == C_in
        res = xm
    else:
        res = conv(xm, wt, bt, 0, 1)
    y = res * (1.0 - gate) + conv(xm, w1, b1, padding, dilation) * gate
    return y * m


def _make_params(key, c_in, c_out, kernel_size):
    ks = jax.random.split(key, 6)
    bound = 1.0 / (c_in * kernel_size) ** 0.5
    bound_t = 1.0 / c_in ** 0.5
    w1 = jax.random.uniform(ks[0], (c_out, c_in, kernel_size), jnp.float32, -bound, bound)
    b1 = jax.random.uniform(ks[1], (c_out,), jnp.float32, -bound, bound)
    w2 = jax.random.uniform(ks[2], (c_out, c_in, kernel_size), jnp.float32, -bound, bound)
    b2 = jax.random.uniform(ks[3], (c_out,), jnp.float32, -bound, bound)
    wt = jax.random.uniform(ks[4], (c_out, c_in, 1), jnp.float32, -bound_t, bound_t)
    bt = jax.random.uniform(ks[5], (c_out,), jnp.float32, -bound_t, bound_t)
    return w1, b1, w2, b2, wt, bt


if __name__ == "__main__":
    key = jax.random.PRNGKey(0)
    B, L = 2, 16
    kernel_size, padding, dilation = 3, 1, 1   # 'same'-length conv (required by residual add)

    k_x, k_m, k_p1, k_p2 = jax.random.split(key, 4)
    attention_mask = (jax.random.uniform(k_m, (B, L)) > 0.3).astype(jnp.float32)

    # ---- case 1: input_channel != output_channel (1x1 `trans` conv, fused) ----
    c_in, c_out = 4, 8
    x = jax.random.normal(k_x, (B, c_in, L), jnp.float32)
    w1, b1, w2, b2, wt, bt = _make_params(k_p1, c_in, c_out, kernel_size)
    y, m_out = gcnn_block(x, attention_mask, w1, b1, w2, b2, wt, bt,
                          kernel_size=kernel_size, padding=padding, dilation=dilation)
    y = jax.block_until_ready(y)
    y_ref = _ref_forward(x, attention_mask, w1, b1, w2, b2, wt, bt,
                         padding=padding, dilation=dilation)
    assert y.shape == (B, c_out, L)
    assert jnp.allclose(y, y_ref, atol=1e-4, rtol=1e-4), "mismatch (trans branch)"
    assert jnp.array_equal(m_out, attention_mask)

    # ---- case 2: input_channel == output_channel (identity residual branch) ----
    c_in2 = c_out2 = 8
    x2 = jax.random.normal(k_x, (B, c_in2, L), jnp.float32)
    w1b, b1b, w2b, b2b, _, _ = _make_params(k_p2, c_in2, c_out2, kernel_size)
    y2, _ = gcnn_block(x2, attention_mask, w1b, b1b, w2b, b2b,
                       kernel_size=kernel_size, padding=padding, dilation=dilation)
    y2 = jax.block_until_ready(y2)
    y2_ref = _ref_forward(x2, attention_mask, w1b, b1b, w2b, b2b, None, None,
                          padding=padding, dilation=dilation)
    assert jnp.allclose(y2, y2_ref, atol=1e-4, rtol=1e-4), "mismatch (identity branch)"

    print("KERNEL_OK")
</pallas_src>

<mosaic_0001>
module attributes {stable_mosaic.version = 11 : i64} {
  func.func @_gcnn_kernel(%arg0: i32, %arg1: i32, %arg2: memref<1x4x18xf32, #tpu.memory_space<vmem>>, %arg3: memref<1x1x18xf32, #tpu.memory_space<vmem>>, %arg4: memref<3x24x4xf32, #tpu.memory_space<vmem>>, %arg5: memref<24x1xf32, #tpu.memory_space<vmem>>, %arg6: memref<1x8x16xf32, #tpu.memory_space<vmem>>) attributes {dimension_semantics = [#tpu.dimension_semantics<parallel>, #tpu.dimension_semantics<parallel>], iteration_bounds = array<i64: 2, 1>, scalar_prefetch = 0 : i64, scratch_operands = 0 : i64, tpu.core_type = #tpu.core_type<tc>, window_params = [{transform_indices = @transform_0, window_bounds = array<i64: 1, 4, 18>}, {transform_indices = @transform_1, window_bounds = array<i64: 1, 1, 18>}, {pipeline_mode = #tpu.pipeline_mode<synchronous>, transform_indices = @transform_2, window_bounds = array<i64: 3, 24, 4>}, {pipeline_mode = #tpu.pipeline_mode<synchronous>, transform_indices = @transform_3, window_bounds = array<i64: 24, 1>}, {transform_indices = @transform_4, window_bounds = array<i64: 1, 8, 16>}]} {
    %c0 = arith.constant 0 : index
    %c0_0 = arith.constant 0 : index
    %c0_1 = arith.constant 0 : index
    %0 = vector.load %arg2[%c0, %c0_0, %c0_1] : memref<1x4x18xf32, #tpu.memory_space<vmem>>, vector<1x4x18xf32>
    %1 = vector.shape_cast %0 : vector<1x4x18xf32> to vector<4x18xf32>
    %c0_2 = arith.constant 0 : index
    %c0_3 = arith.constant 0 : index
    %c0_4 = arith.constant 0 : index
    %2 = vector.load %arg3[%c0_2, %c0_3, %c0_4] : memref<1x1x18xf32, #tpu.memory_space<vmem>>, vector<1x1x18xf32>
    %3 = vector.shape_cast %2 : vector<1x1x18xf32> to vector<1x18xf32>
    %4 = vector.broadcast %3 : vector<1x18xf32> to vector<4x18xf32>
    %5 = arith.mulf %1, %4 : vector<4x18xf32>
    %cst = arith.constant 0.000000e+00 : f32
    %6 = vector.broadcast %cst : f32 to vector<24x16xf32>
    %7 = vector.extract_strided_slice %5 {offsets = [0, 0], sizes = [4, 16], strides = [1, 1]} : vector<4x18xf32> to vector<4x16xf32>
    %c0_5 = arith.constant 0 : index
    %c0_6 = arith.constant 0 : index
    %c0_7 = arith.constant 0 : index
    %8 = vector.load %arg4[%c0_5, %c0_6, %c0_7] : memref<3x24x4xf32, #tpu.memory_space<vmem>>, vector<1x24x4xf32>
    %9 = vector.shape_cast %8 : vector<1x24x4xf32> to vector<24x4xf32>
    %cst_8 = arith.constant dense<0.000000e+00> : vector<24x16xf32>
    %10 = tpu.matmul %9, %7, %cst_8 {dimension_numbers = #tpu.dot_dimension_numbers<[1], [0], [0], [1], [0, 0, 1, 1], [], []>} : vector<24x4xf32>, vector<4x16xf32>, vector<24x16xf32> -> vector<24x16xf32>
    %11 = arith.addf %6, %10 : vector<24x16xf32>
    %12 = vector.extract_strided_slice %5 {offsets = [0, 1], sizes = [4, 16], strides = [1, 1]} : vector<4x18xf32> to vector<4x16xf32>
    %c1 = arith.constant 1 : index
    %c0_9 = arith.constant 0 : index
    %c0_10 = arith.constant 0 : index
    %13 = vector.load %arg4[%c1, %c0_9, %c0_10] : memref<3x24x4xf32, #tpu.memory_space<vmem>>, vector<1x24x4xf32>
    %14 = vector.shape_cast %13 : vector<1x24x4xf32> to vector<24x4xf32>
    %cst_11 = arith.constant dense<0.000000e+00> : vector<24x16xf32>
    %15 = tpu.matmul %14, %12, %cst_11 {dimension_numbers = #tpu.dot_dimension_numbers<[1], [0], [0], [1], [0, 0, 1, 1], [], []>} : vector<24x4xf32>, vector<4x16xf32>, vector<24x16xf32> -> vector<24x16xf32>
    %16 = arith.addf %11, %15 : vector<24x16xf32>
    %17 = vector.extract_strided_slice %5 {offsets = [0, 2], sizes = [4, 16], strides = [1, 1]} : vector<4x18xf32> to vector<4x16xf32>
    %c2 = arith.constant 2 : index
    %c0_12 = arith.constant 0 : index
    %c0_13 = arith.constant 0 : index
    %18 = vector.load %arg4[%c2, %c0_12, %c0_13] : memref<3x24x4xf32, #tpu.memory_space<vmem>>, vector<1x24x4xf32>
    %19 = vector.shape_cast %18 : vector<1x24x4xf32> to vector<24x4xf32>
    %cst_14 = arith.constant dense<0.000000e+00> : vector<24x16xf32>
    %20 = tpu.matmul %19, %17, %cst_14 {dimension_numbers = #tpu.dot_dimension_numbers<[1], [0], [0], [1], [0, 0, 1, 1], [], []>} : vector<24x4xf32>, vector<4x16xf32>, vector<24x16xf32> -> vector<24x16xf32>
    %21 = arith.addf %16, %20 : vector<24x16xf32>
    %c0_15 = arith.constant 0 : index
    %c0_16 = arith.constant 0 : index
    %22 = vector.load %arg5[%c0_15, %c0_16] : memref<24x1xf32, #tpu.memory_space<vmem>>, vector<24x1xf32>
    %23 = vector.broadcast %22 : vector<24x1xf32> to vector<24x16xf32>
    %24 = arith.addf %21, %23 : vector<24x16xf32>
    %25 = vector.extract_strided_slice %24 {offsets = [0, 0], sizes = [8, 16], strides = [1, 1]} : vector<24x16xf32> to vector<8x16xf32>
    %26 = vector.extract_strided_slice %24 {offsets = [8, 0], sizes = [8, 16], strides = [1, 1]} : vector<24x16xf32> to vector<8x16xf32>
    %27 = arith.negf %26 : vector<8x16xf32>
    %28 = math.exp %27 : vector<8x16xf32>
    %cst_17 = arith.constant 1.000000e+00 : f32
    %29 = vector.broadcast %cst_17 : f32 to vector<8x16xf32>
    %30 = arith.addf %29, %28 : vector<8x16xf32>
    %31 = arith.divf %29, %30 : vector<8x16xf32>
    %32 = vector.extract_strided_slice %3 {offsets = [0, 1], sizes = [1, 16], strides = [1, 1]} : vector<1x18xf32> to vector<1x16xf32>
    %33 = vector.extract_strided_slice %24 {offsets = [16, 0], sizes = [8, 16], strides = [1, 1]} : vector<24x16xf32> to vector<8x16xf32>
    %34 = arith.subf %25, %33 : vector<8x16xf32>
    %35 = arith.mulf %31, %34 : vector<8x16xf32>
    %36 = arith.addf %33, %35 : vector<8x16xf32>
    %37 = vector.broadcast %32 : vector<1x16xf32> to vector<8x16xf32>
    %38 = arith.mulf %36, %37 : vector<8x16xf32>
    %c0_18 = arith.constant 0 : index
    %c0_19 = arith.constant 0 : index
    %c0_20 = arith.constant 0 : index
    %39 = vector.load %arg6[%c0_18, %c0_19, %c0_20] : memref<1x8x16xf32, #tpu.memory_space<vmem>>, vector<1x8x16xf32>
    %40 = vector.shape_cast %39 : vector<1x8x16xf32> to vector<8x16xf32>
    %41 = vector.shape_cast %38 : vector<8x16xf32> to vector<1x8x16xf32>
    tpu.vector_store %arg6[%c0_18, %c0_19, %c0_20], %41 {strides = array<i32>} : memref<1x8x16xf32, #tpu.memory_space<vmem>>, vector<1x8x16xf32>,
    return
  }
  func.func @transform_0(%arg0: i32, %arg1: i32) -> (i32, i32, i32) {
    %c0_i32 = arith.constant 0 : i32
    %c0_i32_0 = arith.constant 0 : i32
    %c0_i32_1 = arith.constant 0 : i32
    return %arg0, %c0_i32, %c0_i32_0 : i32, i32, i32
  }
  func.func @transform_1(%arg0: i32, %arg1: i32) -> (i32, i32, i32) {
    %c0_i32 = arith.constant 0 : i32
    %c0_i32_0 = arith.constant 0 : i32
    %c0_i32_1 = arith.constant 0 : i32
    return %arg0, %c0_i32, %c0_i32_0 : i32, i32, i32
  }
  func.func @transform_2(%arg0: i32, %arg1: i32) -> (i32, i32, i32) {
    %c0_i32 = arith.constant 0 : i32
    %c0_i32_0 = arith.constant 0 : i32
    %c0_i32_1 = arith.constant 0 : i32
    %c0_i32_2 = arith.constant 0 : i32
    return %c0_i32, %c0_i32_0, %c0_i32_1 : i32, i32, i32
  }
  func.func @transform_3(%arg0: i32, %arg1: i32) -> (i32, i32) {
    %c0_i32 = arith.constant 0 : i32
    %c0_i32_0 = arith.constant 0 : i32
    %c0_i32_1 = arith.constant 0 : i32
    return %c0_i32, %c0_i32_0 : i32, i32
  }
  func.func @transform_4(%arg0: i32, %arg1: i32) -> (i32, i32, i32) {
    %c0_i32 = arith.constant 0 : i32
    %c0_i32_0 = arith.constant 0 : i32
    return %arg0, %c0_i32, %arg1 : i32, i32, i32
  }
}

</mosaic_0001>

<bundles_post_ra>
// kernel: tpu_custom_call.1
= control target key start
LH: loop header
LB: loop body
LE: loop exit
PB: predicated region body
PF: predicated region fallthrough
CT: control target
= control target key end

     0   :  { %9 = vsyncpa [#allocation3], 0  ;;  %s1061_s0 = inlined_call_operand.vmem [shape: f32[2,4,18], index: 0, kind: input, shape index: {}]   ;;  %s1062_s1 = inlined_call_operand.vmem [shape: f32[2,1,18], index: 1, kind: input, shape index: {}]   ;;  %s1063_s2 = inlined_call_operand.vmem [shape: f32[3,24,4], index: 2, kind: input, shape index: {}]   ;;  %s1064_s3 = inlined_call_operand.vmem [shape: f32[24,1], index: 3, kind: input, shape index: {}]   ;;  %s1065_s4 = inlined_call_operand.hbm [shape: f32[2,8,16], index: 4, kind: output, shape index: {}]  }
   0x1   :  { %11 = vsyncpa [#allocation3 + $0x1], 0  ;;  %s905_s15 = smov 0   ;;  %s907_s16 = smov 0  }
   0x2   :  { %s909_s17 = smov 0   ;;  %s911_s18 = smov 0  }
   0x3   :  { %s913_s19 = smov 0   ;;  %s915_s20 = smov 0  }
   0x4 LB: > { %s652_s21 = sadd.s32 4294967295, %s872_s20   ;;  %s653_s22 = sadd.s32 4294967294, %s872_s20   ;;  %s872_s20 = sphi %s915_s20, %s17_s20   ;;  %s868_s19 = sphi %s913_s19, %s1072_s19   ;;  %s864_s18 = sphi %s911_s18, %s1071_s18   ;;  %s860_s17 = sphi %s909_s17, %s1070_s17   ;;  %s856_s16 = sphi %s907_s16, %s1069_s16   ;;  %s852_s15 = sphi %s905_s15, %s1068_s15  }
   0x5   : > { %s29_s23 = sadd.s32 1, %s868_s19  ;;  %s132_s24 = sadd.s32 1, %s860_s17 }
   0x6   : > { %p31_p0 = scmp.ge.s32.totalorder %s29_s23, 2  ;;  %p142_p1 = scmp.ne.s32.totalorder %s860_s17, %s856_s16 }
   0x7   : > { %p143_p2 = scmp.eq.s32.totalorder %s652_s21, 1  ;;  %p148_p3 = scmp.ne.s32.totalorder %s856_s16, %s852_s15 }
   0x8   : > { %s1074_s23 = smov (%p31_p0, %s29_s23), 0  ;;  %p149_p5 = scmp.eq.s32.totalorder %s653_s22, 1 }
   0x9   : > { %p945_p4 = por %p143_p2, %p142_p1  ;;  %s127_s26 = ssub.s32 %s868_s19, %s1074_s23 }
   0xa   : > { %p656_p6 = scmp.ge.s32.totalorder %s872_s20, 1  ;;  %p130_p7 = scmp.eq.s32.totalorder %s127_s26, 0 }
   0xb   : > { %p952_p8 = por %p149_p5, %p148_p3  ;;  %p186_p9 = scmp.lt.s32.totalorder %s872_s20, 3 }
   0xc   : > { %s958_s28 = scalar_select %p130_p7, %s860_s17, %s132_s24  }
   0xd   : > { %p187_p10 = pnand %p656_p6, %p186_p9 }
   0xe   : > { %p214_p11 = scmp.lt.s32.totalorder (!%p187_p10), %s864_s18, 1  ;;  %s876_s11 = smov (!%p187_p10), 127  }
   0xf   : > { %190 = sbr.rel (%p187_p10) target bundleno = 405 (0x195), region = 36  ;;  %s877_s12 = smov (!%p187_p10), 126  }
  0x10   : > { %s211_s5 = sand.u32 (!%p187_p10), 1, %s856_s16   ;;  %s879_s21 = smov (!%p187_p10), [#allocation2]  }
  0x11   : > { %s657_s6 = sshll.u32 (!%p187_p10), %s211_s5, 3  ;;  %s561_s13 = scalar_lea.sflag (!%p187_p10), [#allocation3], %s211_s5 }
  0x12   : > { %s213_s8 = scalar_lea.vmem (!%p187_p10), [#allocation2], %s657_s6  ;;  %s800_s22 = sshll.u32 (!%p187_p10), %s879_s21, 4  ;;  %s801_s22 = int_to_ptr.vmem [resolvable:$false] %s800_s22 }
  0x13   : > { %s575_s9 = sshll.u32 (!%p187_p10), %s213_s8, 4  ;;  %s576_s9 = int_to_ptr.vmem [resolvable:$true] %s575_s9 }
  0x14   : > { %v874_v0 = vmov 0.0   ;;  %s215_s29 = scalar_select %p214_p11, %s864_s18, 1  ;;  %vm875_vm0 = vmmov 0   ;;  %v525_v4 = vld [vmem:[%s1064_s3 + $0x8] sm:$0xff]  ;;  %v878_v5 = vmov 0   ;;  %v526_v6 = vld [vmem:[%s1064_s3 + $0x10] sm:$0xff] }
  0x15   : > { %695 = vmatprep.subr.mxu0 %v874_v0  ;;  %728 = vmatprep.subr.mxu1 %v874_v0  ;;  %v524_v7 = vld [vmem:[%s1064_s3] sm:$0xff]  ;;  %vm250_vm1 = vcmask 1043456   ;;  %vm240_vm2 = vcmask 31744   ;;  %v660_v10 = vld [vmem:[%s1063_s2 + $0x18] sm:$0xff]  ;;  %v662_v11 = vld [vmem:[%s1063_s2 + $0x28] sm:$0xff]  ;;  %vm558_vm3 = vcmask 130048   ;;  %p803_p1 = scmp.lt.s32.totalorder %s576_s9, %s801_s22 }
  0x16   : > { %700 = vmatprep.mubr.msk.f32.mxu1 %vm875_vm0, %v874_v0  ;;  %697 = vmatprep.mubr.msk.f32.mxu0 %vm875_vm0, %v874_v0  ;;  %s658_s30 = sshll.u32 %s215_s29, 2  ;;  %s220_s7 = scalar_lea.vmem %s1062_s1, %s215_s29  ;;  %v661_v8 = vld [vmem:[%s1063_s2 + $0x20] sm:$0xff]  ;;  %v671_v13 = vld [vmem:[%s1063_s2 + $0x30] sm:$0xff]  ;;  %v672_v15 = vld [vmem:[%s1063_s2 + $0x38] sm:$0xff] }
  0x17   : > { %s217_s10 = scalar_lea.vmem %s1061_s0, %s658_s30  ;;  %v659_v1 = vld [vmem:[%s220_s7] ss:$0 sm:$0xff]  ;;  %790 = vset.pattern.permute.xlu1 %v878_v5  ;;  %791 = vset.pattern.permute.xlu0 %v878_v5  ;;  %v231_v16 = vld [vmem:[%s1063_s2 + $0x8] sm:$0xff]  ;;  %v232_v18 = vld [vmem:[%s1063_s2 + $0x10] sm:$0xff]  ;;  %s680_s7 = sshll.u32 %s864_s18, 7 }
  0x18   : > { %v221_v2 = vld [vmem:[%s217_s10] sm:$0xf]  ;;  %534 = vperm.xlu1 %790, %v525_v4   ;;  %s796_s14 = scalar_lea.vmem %s576_s9, 128  ;;  %s802_s18 = scalar_lea.vmem %s801_s22, 256 }
  0x19   : > { %v229_v3 = vmul.f32 %v659_v1, %v221_v2  ;;  %v230_v14 = vld [vmem:[%s1063_s2] sm:$0xff]  ;;  %p797_p12 = scmp.ne.s32.totalorder %s576_s9, %s796_s14  ;;  %p804_p2 = scmp.lt.s32.totalorder %s802_s18, %s796_s14 }
  0x1a   : > { %v673_v17 = vld [vmem:[%s1063_s2 + $0x40] sm:$0xff] }
  0x1b   : > { %238 = vrot.lane.b32.xlu0 %v229_v3, %s876_s11  ;;  %p798_p13 = pnand %p797_p12, %p945_p4  ;;  %p805_p3 = por %p804_p2, %p803_p1 }
  0x1c   : > { %529 = vperm.xlu1 %790, %v524_v7  }
  0x1d   : > { %p799_p0 = pneg %p798_p13 }
  0x1f   : > { %428 = vrot.lane.b32.xlu0 %v229_v3, %s877_s12  ;;  %s573_s12 = scalar_lea.hbm %s1065_s4, %s680_s7  ;;  %p806_p5 = pnand %p805_p3, %p799_p0 }
  0x20   : > { %554 = vrot.lane.b32.xlu1 %v659_v1, %s876_s11 }
  0x23   : > { %539 = vperm.xlu0 %791, %v526_v6  }
  0x8d   : > { %v239_v9 = vpop.permute.xlu0 %238 }
  0x8e   : > { %696 = vmatpush3.msk.msra.mxu0 %vm250_vm1, %v239_v9  ;;  %729 = vmatpush3.msk.msra.mxu1 %vm250_vm1, %v239_v9 }
  0x8f   : > { %701 = vmatmul.mubr.msk.f32.vlgmr.msra.gmra.mxu1 %vm240_vm2, %v661_v8  ;;  %706 = vmatprep.subr.mxu1 %v874_v0 }
  0x90   : > { %707 = vmatpush3.msk.msra.mxu1 %vm250_vm1, %v229_v3  ;;  %703 = vmatprep.mubr.msk.f32.mxu1 %vm875_vm0, %v874_v0 }
  0x91   : > { %698 = vmatmul.mubr.msk.f32.vlgmr.msra.gmra.mxu0 %vm240_vm2, %v660_v10  ;;  %717 = vmatprep.subr.mxu0 %v874_v0  ;;  %v429_v12 = vpop.permute.xlu0 %428 }
  0x92   : > { %718 = vmatpush3.msk.msra.mxu0 %vm250_vm1, %v429_v12  ;;  %719 = vmatprep.mubr.msk.f32.mxu0 %vm875_vm0, %v874_v0 }
  0x93   : > { %704 = vmatmul.mubr.msk.f32.gmra.mxu1 %vm240_vm2, %v662_v11  ;;  %v535_v35 = vpop.permute.xlu1 %534 }
  0x94   : > { %708 = vmatprep.mubr.msk.f32.mxu1 %vm875_vm0, %v874_v0 }
  0x95   : > { %720 = vmatmul.mubr.msk.f32.vlgmr.msra.gmra.mxu0 %vm240_vm2, %v671_v13 }
  0x96   : > { %722 = vmatprep.mubr.msk.f32.mxu0 %vm875_vm0, %v874_v0 }
  0x97   : > { %709 = vmatmul.mubr.msk.f32.vlgmr.msra.gmra.mxu1 %vm240_vm2, %v230_v14  ;;  %v530_v49 = vpop.permute.xlu1 %529 }
  0x98   : > { %711 = vmatprep.mubr.msk.f32.mxu1 %vm875_vm0, %v874_v0 }
  0x99   : > { %723 = vmatmul.mubr.msk.f32.gmra.mxu0 %vm240_vm2, %v672_v15 }
  0x9a   : > { %725 = vmatprep.mubr.msk.f32.mxu0 %vm875_vm0, %v874_v0 }
  0x9b   : > { %712 = vmatmul.mubr.msk.f32.gmra.mxu1 %vm240_vm2, %v231_v16  ;;  %v555_v55 = vpop.permute.xlu1 %554 }
  0x9c   : > { %714 = vmatprep.mubr.msk.f32.mxu1 %vm875_vm0, %v874_v0 }
  0x9d   : > { %726 = vmatmul.mubr.msk.f32.gmra.mxu0 %vm240_vm2, %v673_v17 }
  0x9e   : > { %v540_v47 = vpop.permute.xlu0 %539 }
  0x9f   : > { %715 = vmatmul.mubr.msk.f32.gmra.mxu1 %vm240_vm2, %v232_v18 }
 0x14f   : > { %v324_v19 = vpop.f32.mrf.mxu1 }
 0x151   : > { %v702_v20 = vpop.f32.mrf.mxu1  ;;  %v319_v21 = vpop.f32.mrf.mxu0 }
 0x153   : > { %v329_v22 = vpop.f32.mrf.mxu1  ;;  %v699_v23 = vpop.f32.mrf.mxu0 }
 0x155   : > { %v705_v24 = vpop.f32.mrf.mxu1  ;;  %v507_v25 = vpop.f32.mrf.mxu0 }
 0x157   : > { %v410_v26 = vpop.f32.mrf.mxu1  ;;  %v721_v27 = vpop.f32.mrf.mxu0 }
 0x158   : > { %v411_v45 = vadd.f32 %v410_v26, %v319_v21 }
 0x159   : > { %v710_v28 = vpop.f32.mrf.mxu1  ;;  %v512_v29 = vpop.f32.mrf.mxu0 }
 0x15a   : > { %v521_v48 = vadd.f32 %v507_v25, %v411_v45 }
 0x15b   : > { %v415_v30 = vpop.f32.mrf.mxu1  ;;  %v724_v31 = vpop.f32.mrf.mxu0 }
 0x15c   : > { %v416_v32 = vadd.f32 %v415_v30, %v324_v19  ;;  %v542_v51 = vadd.f32 %v530_v49, %v521_v48 }
 0x15d   : > { %v713_v33 = vpop.f32.mrf.mxu1  ;;  %v517_v34 = vpop.f32.mrf.mxu0 }
 0x15e   : > { %v522_v36 = vadd.f32 %v512_v29, %v416_v32 }
 0x15f   : > { %v420_v37 = vpop.f32.mrf.mxu1  ;;  %v727_v38 = vpop.f32.mrf.mxu0 }
 0x160   : > { %v543_v39 = vadd.f32 %v535_v35, %v522_v36  ;;  %v421_v44 = vadd.f32 %v420_v37, %v329_v22 }
 0x161   : > { %v716_v40 = vpop.f32.mrf.mxu1 }
 0x162   : > { %v678_v41 = vmul.f32 -1.442695, %v543_v39  ;;  %v523_v46 = vadd.f32 %v517_v34, %v421_v44 }
 0x164   : > { %792 = vpow2.f32 %v678_v41  ;;  %v544_v50 = vadd.f32 %v540_v47, %v523_v46 }
 0x166   : > { %v551_v52 = vsub.f32 %v542_v51, %v544_v50 }
 0x171   : > { %v793_v42 = vpop.eup %792 }
 0x172   : > { %v548_v43 = vadd.f32 1.0, %v793_v42 }
 0x174   : > { %794 = vrcp.f32 %v548_v43 }
 0x181   : > { %v795_v53 = vpop.eup %794 }
 0x182   : > { %v552_v54 = vmul.f32 %v795_v53, %v551_v52 }
 0x184   : > { %v553_v56 = vadd.f32 %v552_v54, %v544_v50 }
 0x186   : > { %v557_v57 = vmul.f32 %v555_v55, %v553_v56 }
 0x188   : > { %559 = vst.msk [vmem:[%s213_s8] sm:$0xff] %vm558_vm3, %v557_v57 }
 0x189   : > { %809 = shalt.err (!%p806_p5)
}
 0x18a   : > { %s810_s24 = scalar_lea.hbm %s573_s12, 128  ;;  %s814_s30 = scalar_lea.hbm %s1065_s4, 256 }
 0x18b   : > { %p811_p6 = scmp.ne.s32.totalorder %s573_s12, %s810_s24  ;;  %p815_p10 = scmp.lt.s32.totalorder %s573_s12, %s1065_s4 }
 0x18c   : > { %p816_p11 = scmp.lt.s32.totalorder %s814_s30, %s810_s24 }
 0x18d   : > { %p812_p7 = pnand %p811_p6, %p945_p4 }
 0x18e   : > { %p817_p12 = por %p816_p11, %p815_p10 }
 0x18f   : > { %p813_p9 = pneg %p812_p7 }
 0x191   : > { %p818_p13 = pnand %p817_p12, %p813_p9 }
 0x193   : > { %821 = shalt.err (!%p818_p13)
}
 0x194   : > { %730 = dma.vmem_to_hbm [thread:$0]  (%p945_p4), %s576_s9, 128, %s573_s12, %s561_s13  }
 0x195 PF: > { %p736_p0 = scmp.ge.s32.totalorder %s872_s20, 2  ;;  %s587_s7 = sand.u32 1, %s852_s15  }
 0x196   : > { %s588_s8 = scalar_lea.sflag [#allocation3], %s587_s7 }
 0x197   : > { %p733_p1 = pnand %p736_p0, %p952_p8 }
 0x199   : > { %p734_p2 = pneg %p733_p1 }
 0x19b   : > { %847 = dma.done.wait (%p734_p2), %s588_s8, 128  }
 0x19c   : > { %849 = vsyncadd (%p734_p2), %s588_s8, 4294967168  ;;  %s17_s20 = sadd.s32 1, %s872_s20   ;;  %s1068_s15 = smov %s856_s16 }
 0x19d   : > { %p14_p3 = scmp.ge.s32.totalorder %s17_s20, 4   ;;  %s1069_s16 = smov %s860_s17 }
 0x19e   : > { %s1070_s17 = smov %s958_s28  ;;  %s1071_s18 = smov %s868_s19 }
 0x19f   : > { %s1072_s19 = smov %s1074_s23  ;;  %16 = sbr.rel (!%p14_p3) target bundleno = 4 (0x4), region = 76 }
 0x1a4   :  { %593 = vsyncpa [#allocation3], 1 }
 0x1a5   :  { %595 = vsyncpa [#allocation3 + $0x1], 1 }

</bundles_post_ra>
